<compile_context>
chip_gen: v7x
topology: tpu7x:2x2x1
jax: 0.10.0
libtpu: 0.0.40
codegen_flags: <defaults>
</compile_context>

<pallas_src>
import functools

import jax
import jax.numpy as jnp
from jax import lax
from jax.experimental import pallas as pl
from jax.experimental.pallas import tpu as pltpu

DEFAULT_EPSILON = 1e-5
_MIB = 1024 * 1024


def _sublane_multiple(dtype):
    """(sublane granularity, itemsize): (8,128) f32, (16,128) bf16, (32,128) int8."""
    itemsize = jnp.dtype(dtype).itemsize
    return max(8, 32 // max(1, itemsize)), itemsize


def _vmem_budget():
    """Per-generation scoped-VMEM limit and per-input block budget (real, padded bytes)."""
    try:
        cap = int(pltpu.get_tpu_info().vmem_capacity_bytes)
    except Exception:
        cap = 64 * _MIB  # conservative fallback == v7x per-TensorCore VMEM
    # v5e/v6e (128 MiB physical): raise the scoped limit to 96 MiB, 8 MiB blocks.
    # v7x (64 MiB physical per TC): cap at 48 MiB, 4 MiB blocks.
    vmem_limit = min((cap * 3) // 4, 96 * _MIB)
    block_bytes = min(8 * _MIB, vmem_limit // 12)  # 2 inputs x 2 pipeline buffers << limit
    return vmem_limit, block_bytes


def _make_kernel(*, four_d, tile, num_tiles, num_parts, num_j, tail):
    """Kernel factory.

    four_d:    True -> blocks are (1, C, tile, 128); False -> (1, C, tile).
    tile:      sublane tile over S (4-D path) or lane tile over M (3-D path).
    num_tiles: total real tiles along the reduction axis.
    num_parts: parallel halves of the reduction (megacore split for N == 1).
    num_j:     tiles per part (grid extent of the reduction axis).
    tail:      valid rows/lanes in the last real tile (0 => last tile is full).
    """
    ragged = tail != 0
    last = num_tiles - 1

    def _accumulate(x_ref, t_ref, ts_acc, it_acc, xs_acc, masked):
        x = x_ref[0].astype(jnp.float32)
        t = t_ref[0].astype(jnp.float32)
        if masked:
            # Static mask for the single ragged last tile: out-of-bounds
            # rows/lanes hold undefined data and must be zeroed before the sums.
            idx = lax.broadcasted_iota(jnp.int32, x.shape, 1)
            ok = idx < tail
            x = jnp.where(ok, x, 0.0)
            t = jnp.where(ok, t, 0.0)
        if four_d:
            # x, t: (C, tile, 128). Reduce only the sublane (S) axis; the lane
            # axis stays wide in the accumulators (plain VALU adds, no per-tile
            # cross-lane XLU reduce) and is folded once in the JAX combine.
            ts_acc[...] += jnp.sum(t, axis=1)
            it_acc[...] += jnp.sum(x * t, axis=1)
            xs_acc[...] += jnp.sum(x, axis=1)
        else:
            # x, t: (C, tile). Fallback for M % 128 != 0 (tiny O(C) XLU reduce).
            ts_acc[...] += jnp.sum(t, axis=-1, keepdims=True)
            it_acc[...] += jnp.sum(x * t, axis=-1, keepdims=True)
            xs_acc[...] += jnp.sum(x, axis=-1, keepdims=True)

    def kernel(x_ref, t_ref, ts_out, it_out, xs_out, ts_acc, it_acc, xs_acc):
        p = pl.program_id(1)
        j = pl.program_id(2)

        @pl.when(j == 0)
        def _():
            ts_acc[...] = jnp.zeros_like(ts_acc)
            it_acc[...] = jnp.zeros_like(it_acc)
            xs_acc[...] = jnp.zeros_like(xs_acc)

        acc = functools.partial(_accumulate, x_ref, t_ref, ts_acc, it_acc, xs_acc)

        if num_parts == 1 and not ragged:
            # Hot path: every tile is full, no mask, no phantom tiles.
            acc(False)
        else:
            g = p * num_j + j  # global tile index along the reduction
            if not ragged:
                @pl.when(g <= last)  # skip phantom tiles of the megacore split
                def _():
                    acc(False)
            else:
                # Keep the mask off the hot path: only the last real tile pays
                # for the iota + selects.
                @pl.when(g < last)
                def _():
                    acc(False)

                @pl.when(g == last)
                def _():
                    acc(True)

        @pl.when(j == num_j - 1)
        def _():
            ts_out[0, 0] = ts_acc[...]
            it_out[0, 0] = it_acc[...]
            xs_out[0, 0] = xs_acc[...]

    return kernel


def generalized_dice_loss(inp, tgt, epsilon=DEFAULT_EPSILON, block_bytes=None):
    """inp, tgt: (N, C, *spatial) arrays (any float/int dtype). Returns scalar f32 loss.

    Inputs stay in HBM in their original dtype (bf16 welcome — halves HBM bytes);
    the kernel upcasts to f32 internally.  `block_bytes` overrides the per-input
    VMEM block budget (mainly for testing the multi-tile / ragged paths).
    """
    assert inp.shape == tgt.shape, "'input' and 'target' must have the same shape"
    N, C = int(inp.shape[0]), int(inp.shape[1])
    M = 1
    for d in inp.shape[2:]:
        M *= int(d)

    sub, itemsize = _sublane_multiple(inp.dtype)
    vmem_limit, auto_block = _vmem_budget()
    if block_bytes is None:
        block_bytes = auto_block
    block_bytes = int(block_bytes)

    four_d = (M % 128 == 0) and (M >= 128)
    if four_d:
        # Primary path: free view (N, C, S, 128); tiles have zero sublane
        # padding (S-tile is a multiple of the dtype packing), so the block
        # budget equals the real VMEM footprint.
        S = M // 128
        x = inp.reshape(N, C, S, 128)
        t = tgt.reshape(N, C, S, 128)
        row_bytes = C * 128 * itemsize
        tile = max(sub, (block_bytes // row_bytes) // sub * sub)
        if tile >= S:
            tile = S  # single tile; a full-extent block is always legal
        num_tiles = pl.cdiv(S, tile)
        tail = S % tile
        lanes = 128
        in_block = (1, C, tile, 128)
    else:
        # Fallback when the fused spatial size is not a multiple of 128.
        # Block footprint uses the PADDED sublane count ceil(C/sub)*sub.
        x = inp.reshape(N, C, M)
        t = tgt.reshape(N, C, M)
        padded_c = pl.cdiv(C, sub) * sub
        tile = max(128, (block_bytes // (padded_c * itemsize)) // 128 * 128)
        if tile >= M:
            tile = M
        num_tiles = pl.cdiv(M, tile)
        tail = M % tile
        lanes = 1
        in_block = (1, C, tile)

    # Megacore: guarantee both v7x TensorCores get work when N == 1 by
    # splitting the reduction tiles into two parallel halves.
    num_parts = 2 if (N == 1 and num_tiles >= 2) else 1
    num_j = pl.cdiv(num_tiles, num_parts)

    kernel = _make_kernel(four_d=four_d, tile=tile, num_tiles=num_tiles,
                          num_parts=num_parts, num_j=num_j, tail=tail)

    def in_index(n, p, j):
        g = p * num_j + j
        if num_parts * num_j != num_tiles:
            g = jnp.minimum(g, num_tiles - 1)  # clamp the phantom tile of the split
        return (n, 0, g, 0) if four_d else (n, 0, g)

    in_spec = pl.BlockSpec(in_block, in_index)
    out_spec = pl.BlockSpec((1, 1, C, lanes), lambda n, p, j: (n, p, 0, 0))
    per_class = jax.ShapeDtypeStruct((N, num_parts, C, lanes), jnp.float32)

    ts, it, xs = pl.pallas_call(
        kernel,
        out_shape=(per_class, per_class, per_class),
        grid_spec=pltpu.PrefetchScalarGridSpec(
            num_scalar_prefetch=0,
            grid=(N, num_parts, num_j),
            in_specs=[in_spec, in_spec],
            out_specs=[out_spec, out_spec, out_spec],
            scratch_shapes=[pltpu.VMEM((C, lanes), jnp.float32)] * 3,
        ),
        compiler_params=pltpu.CompilerParams(
            # Batch axis and the split halves are independent (megacore);
            # the tile axis is the sequential accumulate->finalize reduction.
            dimension_semantics=("parallel", "parallel", "arbitrary"),
            vmem_limit_bytes=vmem_limit,
        ),
    )(x, t)

    # Tiny O(C) combine in plain JAX (matches the PyTorch formula exactly).
    target_sum = ts.sum(axis=(0, 1, 3))                            # (C,)
    class_weights = 1.0 / (target_sum * target_sum + epsilon)      # (C,)
    intersect = (it.sum(axis=(0, 1, 3)) * class_weights).sum() + epsilon
    denominator = ((xs.sum(axis=(0, 1, 3)) + target_sum) * class_weights).sum() + epsilon
    return 1.0 - 2.0 * intersect / denominator


def _reference_gdl(inp, tgt, epsilon=DEFAULT_EPSILON):
    """Pure-JAX reference, literal translation of the PyTorch module."""
    C = inp.shape[1]
    axis_order = (1, 0) + tuple(range(2, inp.ndim))
    x = jnp.transpose(inp, axis_order).reshape(C, -1).astype(jnp.float32)
    t = jnp.transpose(tgt, axis_order).reshape(C, -1).astype(jnp.float32)
    target_sum = t.sum(-1)
    w = 1.0 / (target_sum * target_sum + epsilon)
    intersect = ((x * t).sum(-1) * w).sum() + epsilon
    denominator = ((x + t).sum(-1) * w).sum() + epsilon
    return 1.0 - 2.0 * intersect / denominator


def _make_inputs(key, shape, dtype=jnp.float32):
    k1, k2 = jax.random.split(key)
    n, c = shape[0], shape[1]
    logits = jax.random.normal(k1, shape, jnp.float32)
    probs = jax.nn.softmax(logits, axis=1)
    labels = jax.random.randint(k2, (n,) + shape[2:], 0, c)
    onehot = jax.nn.one_hot(labels, c, axis=1, dtype=jnp.float32)
    return probs.astype(dtype), onehot.astype(dtype)


if __name__ == "__main__":
    key = jax.random.PRNGKey(0)
    keys = jax.random.split(key, 5)

    def check(name, shape, dtype=jnp.float32, block_bytes=None, k=None):
        inp, tgt = _make_inputs(k, shape, dtype)
        loss = jax.block_until_ready(
            generalized_dice_loss(inp, tgt, block_bytes=block_bytes))
        ref = _reference_gdl(inp, tgt)
        assert jnp.allclose(loss, ref, atol=1e-5, rtol=1e-5), (name, loss, ref)

    # 1) 3-D U-Net style (N,C,D,H,W), f32: 4-D fast path, single tile per sample.
    check("5d_single_tile", (2, 4, 8, 16, 16), k=keys[0])

    # 2) 4-D fast path, multiple S tiles with a ragged (masked) tail.
    check("4d_ragged", (2, 3, 18, 128), block_bytes=16384, k=keys[1])

    # 3) N == 1: megacore split of the reduction tiles (phantom tile + ragged tail).
    check("n1_megacore_split", (1, 4, 18, 128), block_bytes=16384, k=keys[2])

    # 4) M not a multiple of 128: 3-D fallback path with lane-masked tail.
    check("3d_fallback_ragged", (2, 3, 18, 18), block_bytes=4096, k=keys[3])

    # 5) bf16 inputs (half the HBM bytes); kernel upcasts to f32 internally.
    check("bf16_inputs", (2, 4, 16, 16), dtype=jnp.bfloat16, k=keys[4])

    print("KERNEL_OK")
</pallas_src>

<mosaic_0001>
module attributes {stable_mosaic.version = 11 : i64} {
  func.func @kernel(%arg0: i32, %arg1: i32, %arg2: i32, %arg3: memref<1x4x16x128xf32, #tpu.memory_space<vmem>>, %arg4: memref<1x4x16x128xf32, #tpu.memory_space<vmem>>, %arg5: memref<1x1x4x128xf32, #tpu.memory_space<vmem>>, %arg6: memref<1x1x4x128xf32, #tpu.memory_space<vmem>>, %arg7: memref<1x1x4x128xf32, #tpu.memory_space<vmem>>, %arg8: memref<4x128xf32, #tpu.memory_space<vmem>>, %arg9: memref<4x128xf32, #tpu.memory_space<vmem>>, %arg10: memref<4x128xf32, #tpu.memory_space<vmem>>) attributes {dimension_semantics = [#tpu.dimension_semantics<parallel>, #tpu.dimension_semantics<parallel>, #tpu.dimension_semantics<arbitrary>], iteration_bounds = array<i64: 2, 1, 1>, scalar_prefetch = 0 : i64, scratch_operands = 3 : i64, tpu.core_type = #tpu.core_type<tc>, window_params = [{transform_indices = @transform_0, window_bounds = array<i64: 1, 4, 16, 128>}, {transform_indices = @transform_1, window_bounds = array<i64: 1, 4, 16, 128>}, {transform_indices = @transform_2, window_bounds = array<i64: 1, 1, 4, 128>}, {transform_indices = @transform_3, window_bounds = array<i64: 1, 1, 4, 128>}, {transform_indices = @transform_4, window_bounds = array<i64: 1, 1, 4, 128>}]} {
    %c0_i32 = arith.constant 0 : i32
    %0 = arith.cmpi eq, %arg2, %c0_i32 : i32
    %1 = arith.extui %0 : i1 to i32
    %c0_i32_0 = arith.constant 0 : i32
    %2 = arith.cmpi ne, %1, %c0_i32_0 : i32
    scf.if %2 {
      %cst_24 = arith.constant 0.000000e+00 : f32
      %23 = vector.broadcast %cst_24 : f32 to vector<4x128xf32>
      %c0_25 = arith.constant 0 : index
      %c0_26 = arith.constant 0 : index
      %24 = vector.load %arg8[%c0_25, %c0_26] : memref<4x128xf32, #tpu.memory_space<vmem>>, vector<4x128xf32>
      tpu.vector_store %arg8[%c0_25, %c0_26], %23 {strides = array<i32>} : memref<4x128xf32, #tpu.memory_space<vmem>>, vector<4x128xf32>,
      %cst_27 = arith.constant 0.000000e+00 : f32
      %25 = vector.broadcast %cst_27 : f32 to vector<4x128xf32>
      %c0_28 = arith.constant 0 : index
      %c0_29 = arith.constant 0 : index
      %26 = vector.load %arg9[%c0_28, %c0_29] : memref<4x128xf32, #tpu.memory_space<vmem>>, vector<4x128xf32>
      tpu.vector_store %arg9[%c0_28, %c0_29], %25 {strides = array<i32>} : memref<4x128xf32, #tpu.memory_space<vmem>>, vector<4x128xf32>,
      %cst_30 = arith.constant 0.000000e+00 : f32
      %27 = vector.broadcast %cst_30 : f32 to vector<4x128xf32>
      %c0_31 = arith.constant 0 : index
      %c0_32 = arith.constant 0 : index
      %28 = vector.load %arg10[%c0_31, %c0_32] : memref<4x128xf32, #tpu.memory_space<vmem>>, vector<4x128xf32>
      tpu.vector_store %arg10[%c0_31, %c0_32], %27 {strides = array<i32>} : memref<4x128xf32, #tpu.memory_space<vmem>>, vector<4x128xf32>,
    } else {
    }
    %c0 = arith.constant 0 : index
    %c0_1 = arith.constant 0 : index
    %c0_2 = arith.constant 0 : index
    %c0_3 = arith.constant 0 : index
    %3 = vector.load %arg3[%c0, %c0_1, %c0_2, %c0_3] : memref<1x4x16x128xf32, #tpu.memory_space<vmem>>, vector<1x4x16x128xf32>
    %4 = vector.shape_cast %3 : vector<1x4x16x128xf32> to vector<4x16x128xf32>
    %c0_4 = arith.constant 0 : index
    %c0_5 = arith.constant 0 : index
    %c0_6 = arith.constant 0 : index
    %c0_7 = arith.constant 0 : index
    %5 = vector.load %arg4[%c0_4, %c0_5, %c0_6, %c0_7] : memref<1x4x16x128xf32, #tpu.memory_space<vmem>>, vector<1x4x16x128xf32>
    %6 = vector.shape_cast %5 : vector<1x4x16x128xf32> to vector<4x16x128xf32>
    %c0_8 = arith.constant 0 : index
    %c0_9 = arith.constant 0 : index
    %7 = vector.load %arg8[%c0_8, %c0_9] : memref<4x128xf32, #tpu.memory_space<vmem>>, vector<4x128xf32>
    %cst = arith.constant dense<0.000000e+00> : vector<4x128xf32>
    %8 = vector.multi_reduction <add>, %6, %cst [1] : vector<4x16x128xf32> to vector<4x128xf32>
    %9 = arith.addf %7, %8 : vector<4x128xf32>
    %c0_10 = arith.constant 0 : index
    %c0_11 = arith.constant 0 : index
    %10 = vector.load %arg8[%c0_10, %c0_11] : memref<4x128xf32, #tpu.memory_space<vmem>>, vector<4x128xf32>
    tpu.vector_store %arg8[%c0_10, %c0_11], %9 {strides = array<i32>} : memref<4x128xf32, #tpu.memory_space<vmem>>, vector<4x128xf32>,
    %c0_12 = arith.constant 0 : index
    %c0_13 = arith.constant 0 : index
    %11 = vector.load %arg9[%c0_12, %c0_13] : memref<4x128xf32, #tpu.memory_space<vmem>>, vector<4x128xf32>
    %12 = arith.mulf %4, %6 : vector<4x16x128xf32>
    %cst_14 = arith.constant dense<0.000000e+00> : vector<4x128xf32>
    %13 = vector.multi_reduction <add>, %12, %cst_14 [1] : vector<4x16x128xf32> to vector<4x128xf32>
    %14 = arith.addf %11, %13 : vector<4x128xf32>
    %c0_15 = arith.constant 0 : index
    %c0_16 = arith.constant 0 : index
    %15 = vector.load %arg9[%c0_15, %c0_16] : memref<4x128xf32, #tpu.memory_space<vmem>>, vector<4x128xf32>
    tpu.vector_store %arg9[%c0_15, %c0_16], %14 {strides = array<i32>} : memref<4x128xf32, #tpu.memory_space<vmem>>, vector<4x128xf32>,
    %c0_17 = arith.constant 0 : index
    %c0_18 = arith.constant 0 : index
    %16 = vector.load %arg10[%c0_17, %c0_18] : memref<4x128xf32, #tpu.memory_space<vmem>>, vector<4x128xf32>
    %cst_19 = arith.constant dense<0.000000e+00> : vector<4x128xf32>
    %17 = vector.multi_reduction <add>, %4, %cst_19 [1] : vector<4x16x128xf32> to vector<4x128xf32>
    %18 = arith.addf %16, %17 : vector<4x128xf32>
    %c0_20 = arith.constant 0 : index
    %c0_21 = arith.constant 0 : index
    %19 = vector.load %arg10[%c0_20, %c0_21] : memref<4x128xf32, #tpu.memory_space<vmem>>, vector<4x128xf32>
    tpu.vector_store %arg10[%c0_20, %c0_21], %18 {strides = array<i32>} : memref<4x128xf32, #tpu.memory_space<vmem>>, vector<4x128xf32>,
    %c0_i32_22 = arith.constant 0 : i32
    %20 = arith.cmpi eq, %arg2, %c0_i32_22 : i32
    %21 = arith.extui %20 : i1 to i32
    %c0_i32_23 = arith.constant 0 : i32
    %22 = arith.cmpi ne, %21, %c0_i32_23 : i32
    scf.if %22 {
      %c0_24 = arith.constant 0 : index
      %c0_25 = arith.constant 0 : index
      %23 = vector.load %arg8[%c0_24, %c0_25] : memref<4x128xf32, #tpu.memory_space<vmem>>, vector<4x128xf32>
      %c0_26 = arith.constant 0 : index
      %c0_27 = arith.constant 0 : index
      %c0_28 = arith.constant 0 : index
      %c0_29 = arith.constant 0 : index
      %24 = vector.load %arg5[%c0_26, %c0_27, %c0_28, %c0_29] : memref<1x1x4x128xf32, #tpu.memory_space<vmem>>, vector<1x1x4x128xf32>
      %25 = vector.shape_cast %24 : vector<1x1x4x128xf32> to vector<4x128xf32>
      %26 = vector.shape_cast %23 : vector<4x128xf32> to vector<1x1x4x128xf32>
      tpu.vector_store %arg5[%c0_26, %c0_27, %c0_28, %c0_29], %26 {strides = array<i32>} : memref<1x1x4x128xf32, #tpu.memory_space<vmem>>, vector<1x1x4x128xf32>,
      %c0_30 = arith.constant 0 : index
      %c0_31 = arith.constant 0 : index
      %27 = vector.load %arg9[%c0_30, %c0_31] : memref<4x128xf32, #tpu.memory_space<vmem>>, vector<4x128xf32>
      %c0_32 = arith.constant 0 : index
      %c0_33 = arith.constant 0 : index
      %c0_34 = arith.constant 0 : index
      %c0_35 = arith.constant 0 : index
      %28 = vector.load %arg6[%c0_32, %c0_33, %c0_34, %c0_35] : memref<1x1x4x128xf32, #tpu.memory_space<vmem>>, vector<1x1x4x128xf32>
      %29 = vector.shape_cast %28 : vector<1x1x4x128xf32> to vector<4x128xf32>
      %30 = vector.shape_cast %27 : vector<4x128xf32> to vector<1x1x4x128xf32>
      tpu.vector_store %arg6[%c0_32, %c0_33, %c0_34, %c0_35], %30 {strides = array<i32>} : memref<1x1x4x128xf32, #tpu.memory_space<vmem>>, vector<1x1x4x128xf32>,
      %c0_36 = arith.constant 0 : index
      %c0_37 = arith.constant 0 : index
      %31 = vector.load %arg10[%c0_36, %c0_37] : memref<4x128xf32, #tpu.memory_space<vmem>>, vector<4x128xf32>
      %c0_38 = arith.constant 0 : index
      %c0_39 = arith.constant 0 : index
      %c0_40 = arith.constant 0 : index
      %c0_41 = arith.constant 0 : index
      %32 = vector.load %arg7[%c0_38, %c0_39, %c0_40, %c0_41] : memref<1x1x4x128xf32, #tpu.memory_space<vmem>>, vector<1x1x4x128xf32>
      %33 = vector.shape_cast %32 : vector<1x1x4x128xf32> to vector<4x128xf32>
      %34 = vector.shape_cast %31 : vector<4x128xf32> to vector<1x1x4x128xf32>
      tpu.vector_store %arg7[%c0_38, %c0_39, %c0_40, %c0_41], %34 {strides = array<i32>} : memref<1x1x4x128xf32, #tpu.memory_space<vmem>>, vector<1x1x4x128xf32>,
    } else {
    }
    return
  }
  func.func @transform_0(%arg0: i32, %arg1: i32, %arg2: i32) -> (i32, i32, i32, i32) {
    %c1_i32 = arith.constant 1 : i32
    %0 = arith.muli %arg1, %c1_i32 : i32
    %1 = arith.addi %0, %arg2 : i32
    %c0_i32 = arith.constant 0 : i32
    %c0_i32_0 = arith.constant 0 : i32
    %c0_i32_1 = arith.constant 0 : i32
    return %arg0, %c0_i32, %1, %c0_i32_0 : i32, i32, i32, i32
  }
  func.func @transform_1(%arg0: i32, %arg1: i32, %arg2: i32) -> (i32, i32, i32, i32) {
    %c1_i32 = arith.constant 1 : i32
    %0 = arith.muli %arg1, %c1_i32 : i32
    %1 = arith.addi %0, %arg2 : i32
    %c0_i32 = arith.constant 0 : i32
    %c0_i32_0 = arith.constant 0 : i32
    %c0_i32_1 = arith.constant 0 : i32
    return %arg0, %c0_i32, %1, %c0_i32_0 : i32, i32, i32, i32
  }
  func.func @transform_2(%arg0: i32, %arg1: i32, %arg2: i32) -> (i32, i32, i32, i32) {
    %c0_i32 = arith.constant 0 : i32
    %c0_i32_0 = arith.constant 0 : i32
    %c0_i32_1 = arith.constant 0 : i32
    return %arg0, %arg1, %c0_i32, %c0_i32_0 : i32, i32, i32, i32
  }
  func.func @transform_3(%arg0: i32, %arg1: i32, %arg2: i32) -> (i32, i32, i32, i32) {
    %c0_i32 = arith.constant 0 : i32
    %c0_i32_0 = arith.constant 0 : i32
    %c0_i32_1 = arith.constant 0 : i32
    return %arg0, %arg1, %c0_i32, %c0_i32_0 : i32, i32, i32, i32
  }
  func.func @transform_4(%arg0: i32, %arg1: i32, %arg2: i32) -> (i32, i32, i32, i32) {
    %c0_i32 = arith.constant 0 : i32
    %c0_i32_0 = arith.constant 0 : i32
    %c0_i32_1 = arith.constant 0 : i32
    return %arg0, %arg1, %c0_i32, %c0_i32_0 : i32, i32, i32, i32
  }
}

</mosaic_0001>

<bundles_post_ra>
// kernel: tpu_custom_call.1
= control target key start
LH: loop header
LB: loop body
LE: loop exit
PB: predicated region body
PF: predicated region fallthrough
CT: control target
= control target key end

     0   :  { %s1404_s0 = inlined_call_operand.hbm [shape: f32[2,4,16,128], index: 0, kind: input, shape index: {}]   ;;  %s1405_s1 = inlined_call_operand.hbm [shape: f32[2,4,16,128], index: 1, kind: input, shape index: {}]   ;;  %s1406_s2 = inlined_call_operand.hbm [shape: f32[2,1,4,128], index: 2, kind: output, shape index: {0}]   ;;  %s1407_s3 = inlined_call_operand.hbm [shape: f32[2,1,4,128], index: 3, kind: output, shape index: {1}]   ;;  %s1408_s4 = inlined_call_operand.hbm [shape: f32[2,1,4,128], index: 4, kind: output, shape index: {2}]  }
   0x1   :  { %1413 = sst [smem:[#allocation18_spill]] %s1404_s0 }
   0x2   :  { %10 = vsyncpa [#allocation6], 0 }
   0x3   :  { %12 = vsyncpa [#allocation6 + $0x1], 0 }
   0x4   :  { %13 = vsyncpa [#allocation9], 0 }
   0x5   :  { %15 = vsyncpa [#allocation9 + $0x1], 0 }
   0x6   :  { %16 = vsyncpa [#allocation7], 0 }
   0x7   :  { %18 = vsyncpa [#allocation7 + $0x1], 0 }
   0x8   :  { %19 = vsyncpa [#allocation12], 0 }
   0x9   :  { %21 = vsyncpa [#allocation12 + $0x1], 0  ;;  %s1053_s15 = smov 0   ;;  %s1055_s16 = smov 0  }
   0xa   :  { %s1057_s17 = smov 0   ;;  %s1059_s18 = smov 0  }
   0xb   :  { %s1061_s19 = smov 0   ;;  %s1063_s20 = smov 0  }
   0xc LB: > { %s1084_s21 = sadd.s32 4294967295, %s1018_s20   ;;  %s1409_s22 = sadd.s32 4294967294, %s1018_s20   ;;  %s1018_s20 = sphi %s1063_s20, %s27_s20   ;;  %s1014_s19 = sphi %s1061_s19, %s1432_s19   ;;  %s1010_s18 = sphi %s1059_s18, %s1431_s18   ;;  %s1006_s17 = sphi %s1057_s17, %s1430_s17   ;;  %s1002_s16 = sphi %s1055_s16, %s1429_s16   ;;  %s998_s15 = sphi %s1053_s15, %s1428_s15  }
   0xd   : > { %s46_s23 = sadd.s32 1, %s1014_s19  ;;  %s57_s24 = sadd.s32 1, %s1006_s17 }
   0xe   : > { %p48_p0 = scmp.ge.s32.totalorder %s46_s23, 2  ;;  %p64_p1 = scmp.ne.s32.totalorder %s1006_s17, %s1002_s16 }
   0xf   : > { %p65_p2 = scmp.eq.s32.totalorder %s1018_s20, 0  ;;  %p70_p3 = scmp.ne.s32.totalorder %s1002_s16, %s998_s15 }
  0x10   : > { %s1434_s23 = smov (%p48_p0, %s46_s23), 0  ;;  %p71_p5 = scmp.eq.s32.totalorder %s1084_s21, 0 }
  0x11   : > { %p1096_p4 = por %p65_p2, %p64_p1  ;;  %s52_s26 = ssub.s32 %s1014_s19, %s1434_s23 }
  0x12   : > { %p126_p6 = scmp.eq.s32.totalorder %s1084_s21, 1  ;;  %p55_p7 = scmp.eq.s32.totalorder %s52_s26, 0 }
  0x13   : > { %p1104_p8 = por %p71_p5, %p70_p3  ;;  %p132_p10 = scmp.eq.s32.totalorder %s1409_s22, 1 }
  0x14   : > { %p1108_p9 = por %p126_p6, %p64_p1  ;;  %p759_p13 = scmp.lt.s32.totalorder %s1018_s20, 2 }
  0x15   : > { %s1415_s27 = scalar_select %p1104_p8, 1, 0 }
  0x16   : > { %s1416_s28 = scalar_select %p1108_p9, 1, 0 }
  0x17   : > { %s1115_s29 = scalar_select %p55_p7, %s1006_s17, %s57_s24  }
  0x18   : > { %p1117_p11 = por %p132_p10, %p70_p3  ;;  %s1124_s5 = sand.u32 1, %s1006_s17  }
  0x19   : > { %s710_s6 = sshll.u32 %s1124_s5, 6  ;;  %s730_s7 = sshll.u32 %s1014_s19, 10 }
  0x1a   : > { %s1417_s30 = scalar_select %p1117_p11, 1, 0 }
  0x1b   : > { %s1418_s0 = sld [smem:[#allocation18_spill]]  ;;  %s212_s11 = scalar_lea.vmem [#allocation5], %s710_s6 }
  0x1c   : > { %s222_s12 = sshll.u32 %s212_s11, 4  ;;  %p1141_p0 = pnand %p759_p13, %p1096_p4  ;;  %s1137_s12 = int_to_ptr.vmem [resolvable:$true] %s222_s12 }
  0x1d   : > { %s209_s14 = scalar_lea.sflag [#allocation6], %s1124_s5 }
  0x1e   : > { %p814_p3 = pneg %p1141_p0 }
  0x21   : > { %s1133_s10 = scalar_lea.hbm %s1418_s0, %s730_s7  ;;  %s817_s25 = scalar_lea.hbm %s1418_s0, 2048 }
  0x22   : > { %s812_s24 = scalar_lea.hbm %s1133_s10, 1024  ;;  %p818_p4 = scmp.lt.u32.totalorder %s1133_s10, %s1418_s0 }
  0x23   : > { %p813_p2 = scmp.ne.s32.totalorder %s1133_s10, %s812_s24  ;;  %p819_p7 = scmp.lt.u32.totalorder %s817_s25, %s812_s24 }
  0x24   : > { %p821_p13 = scmp.lt.u32.totalorder %s812_s24, %s1133_s10 }
  0x25   : > { %p815_p5 = pnand %p814_p3, %p813_p2  ;;  %p820_p10 = por %p819_p7, %p818_p4 }
  0x27   : > { %p816_p6 = pneg %p815_p5  ;;  %p822_p12 = por %p821_p13, %p820_p10 }
  0x29   : > { %p823_p1 = pnand %p822_p12, %p816_p6 }
  0x2b   : > { %826 = shalt.err (!%p823_p1)
}
  0x2c   : > { %s827_s22 = scalar_lea.vmem %s1137_s12, 1024  ;;  %s1020_s26 = smov [#allocation5]  }
  0x2d   : > { %p828_p2 = scmp.ne.s32.totalorder %s1137_s12, %s827_s22  ;;  %s832_s8 = sshll.u32 %s1020_s26, 4  ;;  %s833_s8 = int_to_ptr.vmem [resolvable:$false] %s832_s8 }
  0x2e   : > { %s834_s9 = scalar_lea.vmem %s833_s8, 2048  ;;  %p835_p9 = scmp.lt.s32.totalorder %s1137_s12, %s833_s8 }
  0x2f   : > { %p830_p5 = pnand %p828_p2, %p814_p3  ;;  %p836_p4 = scmp.lt.s32.totalorder %s834_s9, %s827_s22 }
  0x31   : > { %p831_p11 = pneg %p830_p5  ;;  %p837_p7 = por %p836_p4, %p835_p9 }
  0x33   : > { %p838_p10 = pnand %p837_p7, %p831_p11 }
  0x35   : > { %841 = shalt.err (!%p838_p10)
}
  0x36   : > { %s1411_s24 = smov 128   ;;  %s1022_s25 = smov 8  }
  0x37   : > { %745 = dma.hbm_to_vmem [thread:$0]  (!%p1141_p0), %s1133_s10, 1024, %s1137_s12, %s209_s14, %s1411_s24, %s1411_s24, %s1022_s25  }
  0x38   : > { %p254_p9 = scmp.lt.s32.totalorder %s1018_s20, 3  ;;  %s1183_s26 = scalar_lea.hbm %s1405_s1, %s730_s7 }
  0x39   : > { %p1420_p11 = scmp.ge.s32.totalorder %s1018_s20, 1  ;;  %s236_s9 = scalar_lea.vmem [#allocation8], %s710_s6 }
  0x3a   : > { %s246_s0 = sshll.u32 %s236_s9, 4  ;;  %s233_s10 = scalar_lea.sflag [#allocation9], %s1124_s5  ;;  %s1193_s0 = int_to_ptr.vmem [resolvable:$true] %s246_s0 }
  0x3b   : > { %p1187_p12 = pnand %p1420_p11, %p254_p9  ;;  %s842_s12 = scalar_lea.hbm %s1183_s26, 1024 }
  0x3c   : > { %p843_p1 = scmp.ne.s32.totalorder %s1183_s26, %s842_s12  ;;  %s847_s22 = scalar_lea.hbm %s1405_s1, 2048 }
  0x3d   : > { %p848_p2 = scmp.lt.u32.totalorder %s1183_s26, %s1405_s1  ;;  %p849_p5 = scmp.lt.u32.totalorder %s847_s22, %s842_s12 }
  0x3e   : > { %p845_p6 = pnand %p843_p1, %p814_p3  ;;  %p851_p7 = scmp.lt.u32.totalorder %s842_s12, %s1183_s26 }
  0x3f   : > { %p850_p4 = por %p849_p5, %p848_p2 }
  0x40   : > { %p846_p13 = pneg %p845_p6 }
  0x41   : > { %p852_p10 = por %p851_p7, %p850_p4 }
  0x43   : > { %p853_p9 = pnand %p852_p10, %p846_p13 }
  0x45   : > { %856 = shalt.err (!%p853_p9)
}
  0x46   : > { %s857_s6 = scalar_lea.vmem %s1193_s0, 1024  ;;  %s1023_s9 = smov [#allocation8]  }
  0x47   : > { %p858_p11 = scmp.ne.s32.totalorder %s1193_s0, %s857_s6  ;;  %s862_s7 = sshll.u32 %s1023_s9, 4  ;;  %s863_s7 = int_to_ptr.vmem [resolvable:$false] %s862_s7 }
  0x48   : > { %s864_s24 = scalar_lea.vmem %s863_s7, 2048  ;;  %p865_p8 = scmp.lt.s32.totalorder %s1193_s0, %s863_s7 }
  0x49   : > { %p860_p1 = pnand %p858_p11, %p814_p3  ;;  %p866_p2 = scmp.lt.s32.totalorder %s864_s24, %s857_s6 }
  0x4b   : > { %p861_p6 = pneg %p860_p1  ;;  %p867_p5 = por %p866_p2, %p865_p8 }
  0x4d   : > { %p868_p4 = pnand %p867_p5, %p861_p6 }
  0x4f   : > { %871 = shalt.err (!%p868_p4)
}
  0x50   : > { %s1422_s12 = smov 128   ;;  %258 = sbr.rel (%p1187_p12) target bundleno = 185 (0xb9), region = 28 }
  0x51   : > { %748 = dma.hbm_to_vmem [thread:$0]  (!%p1141_p0), %s1183_s26, 1024, %s1193_s0, %s233_s10, %s1422_s12, %s1422_s12, %s1022_s25  }
  0x52   : > { %s1227_s14 = sand.u32 (!%p1187_p12), 1, %s1002_s16   ;;  %p1423_p8 = scmp.ne.s32.totalorder (!%p1187_p12), %s1415_s27, 0 }
  0x53   : > { %s717_s22 = sshll.u32 (!%p1187_p12), %s1227_s14, 6  ;;  %s261_s11 = scalar_lea.sflag (!%p1187_p12), [#allocation6], %s1227_s14 }
  0x54   : > { %s264_s13 = scalar_lea.vmem (!%p1187_p12), [#allocation5], %s717_s22 }
  0x57   : > { %981 = dma.done.wait (%p1423_p8), %s261_s11, 1024  }
  0x58   : > { %983 = vsyncadd (%p1423_p8), %s261_s11, 4294966272  ;;  %s270_s0 = scalar_lea.sflag [#allocation9], %s1227_s14  ;;  %s1236_s5 = scalar_lea.vmem [#allocation8], %s717_s22 }
  0x59   : > { %985 = dma.done.wait (%p1423_p8), %s270_s0, 1024  }
  0x5a   : > { %987 = vsyncadd (%p1423_p8), %s270_s0, 4294966272  ;;  %v1024_v0 = vmov 0.0   ;;  %v324_v1 = vld [vmem:[%s264_s13] sm:$0xff]  ;;  %v325_v2 = vld [vmem:[%s264_s13 + $0x8] sm:$0xff]  ;;  %vm373_vm0 = vcmask 1041409   ;;  %vm375_vm1 = vcmask 1042434  }
  0x5b   : > { %322 = vst [vmem:[#allocation3] sm:$0xf] %v1024_v0  ;;  %321 = vst [vmem:[#allocation2] sm:$0xf] %v1024_v0  ;;  %v326_v3 = vld [vmem:[%s264_s13 + $0x10] sm:$0xff]  ;;  %v327_v4 = vld [vmem:[%s264_s13 + $0x18] sm:$0xff]  ;;  %v1242_v7 = vadd.f32 %v325_v2, %v324_v1 }
  0x5c   : > { %323 = vst [vmem:[#allocation4] sm:$0xf] %v1024_v0  ;;  %v328_v5 = vld [vmem:[%s264_s13 + $0x20] sm:$0xff]  ;;  %v329_v6 = vld [vmem:[%s264_s13 + $0x28] sm:$0xff]  ;;  %v330_v8 = vld [vmem:[%s264_s13 + $0x30] sm:$0xff]  ;;  %v1245_v11 = vadd.f32 %v327_v4, %v326_v3  ;;  %vm377_vm2 = vcmask 1043459  }
  0x5d   : > { %v331_v9 = vld [vmem:[%s264_s13 + $0x38] sm:$0xff]  ;;  %v332_v10 = vld [vmem:[%s1236_s5] sm:$0xff]  ;;  %v333_v12 = vld [vmem:[%s1236_s5 + $0x8] sm:$0xff]  ;;  %v431_v16 = vrot.slane %v1242_v7, 4  ;;  %v1251_v17 = vadd.f32 %v329_v6, %v328_v5  ;;  %s1270_s27 = sshll.u32 %s1227_s14, 2  ;;  %s482_s8 = sand.u32 1, %s1084_s21  }
  0x5e   : > { %v334_v13 = vld [vmem:[%s1236_s5 + $0x10] sm:$0xff]  ;;  %v335_v14 = vld [vmem:[%s1236_s5 + $0x18] sm:$0xff]  ;;  %v383_v15 = vmul.f32 %v332_v10, %v324_v1  ;;  %v1253_v18 = vadd.f32 %v331_v9, %v330_v8  ;;  %v336_v19 = vld [vmem:[%s1236_s5 + $0x20] sm:$0xff]  ;;  %v384_v22 = vmul.f32 %v333_v12, %v325_v2  ;;  %v341_v25 = vadd.f32 %v333_v12, %v332_v10  ;;  %s305_s25 = scalar_lea.vmem [#allocation11], %s1270_s27  ;;  %s1280_s10 = sshll.u32 %s1010_s18, 6 }
  0x5f   : > { %v337_v20 = vld [vmem:[%s1236_s5 + $0x28] sm:$0xff]  ;;  %v338_v21 = vld [vmem:[%s1236_s5 + $0x30] sm:$0xff]  ;;  %v385_v23 = vmul.f32 %v334_v13, %v326_v3  ;;  %v386_v24 = vmul.f32 %v335_v14, %v327_v4  ;;  %v339_v26 = vld [vmem:[%s1236_s5 + $0x38] sm:$0xff]  ;;  %v387_v27 = vmul.f32 %v336_v19, %v328_v5  ;;  %v348_v30 = vadd.f32 %v335_v14, %v334_v13  ;;  %s516_s26 = sshll.u32 %s305_s25, 4  ;;  %s298_s6 = scalar_lea.vmem [#allocation10], %s1270_s27  ;;  %s1283_s26 = int_to_ptr.vmem [resolvable:$true] %s516_s26 }
  0x60   : > { %v388_v28 = vmul.f32 %v337_v20, %v329_v6  ;;  %v389_v29 = vmul.f32 %v338_v21, %v330_v8  ;;  %v390_v31 = vmul.f32 %v339_v26, %v331_v9  ;;  %v391_v32 = vadd.f32 %v384_v22, %v383_v15  ;;  %s502_s9 = sshll.u32 %s298_s6, 4  ;;  %s1289_s24 = scalar_lea.hbm %s1407_s3, %s1280_s10  ;;  %s1292_s9 = int_to_ptr.vmem [resolvable:$true] %s502_s9 }
  0x61   : > { %v398_v33 = vadd.f32 %v386_v24, %v385_v23  ;;  %v342_v34 = vrot.slane %v341_v25, 4  ;;  %v349_v36 = vrot.slane %v348_v30, 4  ;;  %v355_v37 = vadd.f32 %v337_v20, %v336_v19  ;;  %s1298_s22 = scalar_lea.hbm %s1406_s2, %s1280_s10  ;;  %s1302_s11 = scalar_lea.sflag [#allocation12], %s482_s8 }
  0x62   : > { %v405_v35 = vadd.f32 %v388_v28, %v387_v27  ;;  %v362_v38 = vadd.f32 %v339_v26, %v338_v21  ;;  %v392_v39 = vrot.slane %v391_v32, 4  ;;  %v412_v41 = vadd.f32 %v390_v31, %v389_v29  ;;  %v382_v28 = vld [vmem:[#allocation3] sm:$0xf]  ;;  %v340_v31 = vld [vmem:[#allocation2] sm:$0xf]  ;;  %s872_s13 = scalar_lea.vmem %s1283_s26, 64 }
  0x63   : > { %v399_v40 = vrot.slane %v398_v33, 4  ;;  %v343_v42 = vadd.f32 %v342_v34, %v341_v25  ;;  %v350_v44 = vadd.f32 %v349_v36, %v348_v30  ;;  %v356_v45 = vrot.slane %v355_v37, 4  ;;  %p873_p0 = scmp.ne.s32.totalorder %s1283_s26, %s872_s13  ;;  %p1424_p3 = scmp.ne.s32.totalorder %s1416_s28, 0 }
  0x64   : > { %v406_v43 = vrot.slane %v405_v35, 4  ;;  %v363_v46 = vrot.slane %v362_v38, 4  ;;  %v393_v47 = vadd.f32 %v392_v39, %v391_v32  ;;  %v413_v49 = vrot.slane %v412_v41, 4  ;;  %s1025_s0 = smov [#allocation11]  }
  0x65   : > { %v400_v48 = vadd.f32 %v399_v40, %v398_v33  ;;  %v344_v50 = vrot.slane %v343_v42, 2  ;;  %v351_v52 = vrot.slane %v350_v44, 2  ;;  %v357_v53 = vadd.f32 %v356_v45, %v355_v37  ;;  %p874_p12 = pnand %p873_p0, %p1424_p3  ;;  %s876_s5 = sshll.u32 %s1025_s0, 4  ;;  %s877_s5 = int_to_ptr.vmem [resolvable:$false] %s876_s5 }
  0x66   : > { %v407_v51 = vadd.f32 %v406_v43, %v405_v35  ;;  %v364_v54 = vadd.f32 %v363_v46, %v362_v38  ;;  %v394_v55 = vrot.slane %v393_v47, 2  ;;  %v414_v57 = vadd.f32 %v413_v49, %v412_v41  ;;  %s878_s7 = scalar_lea.vmem %s877_s5, 128  ;;  %p879_p7 = scmp.lt.s32.totalorder %s1283_s26, %s877_s5 }
  0x67   : > { %v401_v56 = vrot.slane %v400_v48, 2  ;;  %v345_v58 = vadd.f32 %v344_v50, %v343_v42  ;;  %v352_v60 = vadd.f32 %v351_v52, %v350_v44  ;;  %v358_v61 = vrot.slane %v357_v53, 2  ;;  %p875_p13 = pneg %p874_p12  ;;  %p880_p10 = scmp.lt.s32.totalorder %s878_s7, %s872_s13 }
  0x68   : > { %v408_v59 = vrot.slane %v407_v51, 2  ;;  %v365_v62 = vrot.slane %v364_v54, 2  ;;  %v395_v63 = vadd.f32 %v394_v55, %v393_v47  ;;  %v415_v1 = vrot.slane %v414_v57, 2  ;;  %v429_v55 = vld [vmem:[#allocation4] sm:$0xf] }
  0x69   : > { %v402_v0 = vadd.f32 %v401_v56, %v400_v48  ;;  %v346_v2 = vrot.slane %v345_v58, 1  ;;  %v353_v4 = vrot.slane %v352_v60, 1  ;;  %v359_v5 = vadd.f32 %v358_v61, %v357_v53  ;;  %p881_p9 = por %p880_p10, %p879_p7 }
  0x6a   : > { %v409_v3 = vadd.f32 %v408_v59, %v407_v51  ;;  %v366_v6 = vadd.f32 %v365_v62, %v364_v54  ;;  %v396_v8 = vrot.slane %v395_v63, 1  ;;  %v416_v10 = vadd.f32 %v415_v1, %v414_v57 }
  0x6b   : > { %v403_v9 = vrot.slane %v402_v0, 1  ;;  %v347_v12 = vadd.f32 %v346_v2, %v345_v58  ;;  %v354_v14 = vadd.f32 %v353_v4, %v352_v60  ;;  %v360_v15 = vrot.slane %v359_v5, 1  ;;  %p882_p11 = pnand %p881_p9, %p875_p13 }
  0x6c   : > { %v410_v13 = vrot.slane %v409_v3, 1  ;;  %v367_v19 = vrot.slane %v366_v6, 1  ;;  %v397_v20 = vadd.f32 %v396_v8, %v395_v63  ;;  %v417_v22 = vrot.slane %v416_v10, 1 }
  0x6d   : > { %v404_v21 = vadd.f32 %v403_v9, %v402_v0  ;;  %v432_v23 = vadd.f32 %v431_v16, %v1242_v7  ;;  %v361_v25 = vadd.f32 %v360_v15, %v359_v5  ;;  %v374_v27 = vsel %vm373_vm0, %v354_v14, %v347_v12 }
  0x6e   : > { %v411_v24 = vadd.f32 %v410_v13, %v409_v3  ;;  %v368_v26 = vadd.f32 %v367_v19, %v366_v6  ;;  %v418_v29 = vadd.f32 %v417_v22, %v416_v10  ;;  %v438_v33 = vrot.slane %v1245_v11, 4 }
  0x6f   : > { %v423_v30 = vsel %vm373_vm0, %v404_v21, %v397_v20  ;;  %v433_v32 = vrot.slane %v432_v23, 2  ;;  %v376_v35 = vsel %vm375_vm1, %v361_v25, %v374_v27  ;;  %v445_v36 = vrot.slane %v1251_v17, 4 }
  0x70   : > { %v424_v34 = vsel %vm375_vm1, %v411_v24, %v423_v30  ;;  %v452_v7 = vrot.slane %v1253_v18, 4  ;;  %v378_v37 = vsel %vm377_vm2, %v368_v26, %v376_v35  ;;  %v439_v39 = vadd.f32 %v438_v33, %v1245_v11 }
  0x71   : > { %v425_v16 = vsel %vm377_vm2, %v418_v29, %v424_v34  ;;  %v434_v38 = vadd.f32 %v433_v32, %v432_v23  ;;  %v380_v41 = vadd.f32 %v378_v37, %v340_v31  ;;  %v446_v42 = vadd.f32 %v445_v36, %v1251_v17 }
  0x72   : > { %v427_v40 = vadd.f32 %v425_v16, %v382_v28  ;;  %v453_v43 = vadd.f32 %v452_v7, %v1253_v18  ;;  %v440_v45 = vrot.slane %v439_v39, 2 }
  0x73   : > { %v435_v44 = vrot.slane %v434_v38, 1  ;;  %381 = vst [vmem:[#allocation2] sm:$0xf] %v380_v41  ;;  %v447_v46 = vrot.slane %v446_v42, 2 }
  0x74   : > { %428 = vst [vmem:[#allocation3] sm:$0xf] %v427_v40  ;;  %v454_v47 = vrot.slane %v453_v43, 2  ;;  %v441_v48 = vadd.f32 %v440_v45, %v439_v39 }
  0x75   : > { %v448_v49 = vadd.f32 %v447_v46, %v446_v42  ;;  %v436_v11 = vadd.f32 %v435_v44, %v434_v38 }
  0x76   : > { %v455_v50 = vadd.f32 %v454_v47, %v453_v43  ;;  %v442_v51 = vrot.slane %v441_v48, 1 }
  0x77   : > { %v449_v17 = vrot.slane %v448_v49, 1 }
  0x78   : > { %v456_v18 = vrot.slane %v455_v50, 1  ;;  %v443_v52 = vadd.f32 %v442_v51, %v441_v48 }
  0x79   : > { %v450_v53 = vadd.f32 %v449_v17, %v448_v49 }
  0x7a   : > { %v457_v54 = vadd.f32 %v456_v18, %v455_v50  ;;  %v462_v56 = vsel %vm373_vm0, %v443_v52, %v436_v11  ;;  %v471_v58 = vld [vmem:[#allocation2] sm:$0xf] }
  0x7b   : > { %v473_v57 = vld [vmem:[#allocation3] sm:$0xf]  ;;  %v463_v59 = vsel %vm375_vm1, %v450_v53, %v462_v56  ;;  %472 = vst [vmem:[%s298_s6] sm:$0xf] %v471_v58 }
  0x7c   : > { %474 = vst [vmem:[%s305_s25] sm:$0xf] %v473_v57  ;;  %v464_v60 = vsel %vm377_vm2, %v457_v54, %v463_v59 }
  0x7d   : > { %885 = shalt.err (!%p882_p11)
}
  0x7e   : > { %s886_s25 = scalar_lea.hbm %s1289_s24, 64  ;;  %s890_s21 = scalar_lea.hbm %s1407_s3, 128 }
  0x7f   : > { %p887_p1 = scmp.ne.s32.totalorder %s1289_s24, %s886_s25  ;;  %p891_p5 = scmp.lt.u32.totalorder %s1289_s24, %s1407_s3 }
  0x80   : > { %p892_p4 = scmp.lt.u32.totalorder %s890_s21, %s886_s25  ;;  %p894_p0 = scmp.lt.u32.totalorder %s886_s25, %s1289_s24 }
  0x81   : > { %p888_p6 = pnand %p887_p1, %p1424_p3 }
  0x82   : > { %p893_p8 = por %p892_p4, %p891_p5 }
  0x83   : > { %p889_p2 = pneg %p888_p6 }
  0x84   : > { %p895_p12 = por %p894_p0, %p893_p8 }
  0x86   : > { %p896_p13 = pnand %p895_p12, %p889_p2 }
  0x88   : > { %899 = shalt.err (!%p896_p13)
}
  0x89   : > { %737 = dma.vmem_to_hbm [thread:$0]  (%p1424_p3), %s1283_s26, 64, %s1289_s24, %s1302_s11   ;;  %v466_v61 = vadd.f32 %v464_v60, %v429_v55 }
  0x8a   : > { %s478_s13 = scalar_lea.sflag [#allocation7], %s1227_s14  ;;  %s900_s0 = scalar_lea.vmem %s1292_s9, 64 }
  0x8b   : > { %p901_p7 = scmp.ne.s32.totalorder %s1292_s9, %s900_s0  ;;  %s1026_s5 = smov [#allocation10]  }
  0x8c   : > { %s904_s7 = sshll.u32 %s1026_s5, 4  ;;  %s905_s7 = int_to_ptr.vmem [resolvable:$false] %s904_s7 }
  0x8d   : > { %p902_p10 = pnand %p901_p7, %p1424_p3  ;;  %s906_s25 = scalar_lea.vmem %s905_s7, 128 }
  0x8e   : > { %p907_p11 = scmp.lt.s32.totalorder %s1292_s9, %s905_s7  ;;  %p908_p1 = scmp.lt.s32.totalorder %s906_s25, %s900_s0 }
  0x8f   : > { %p903_p9 = pneg %p902_p10 }
  0x90   : > { %p909_p6 = por %p908_p1, %p907_p11 }
  0x92   : > { %p910_p2 = pnand %p909_p6, %p903_p9 }
  0x94   : > { %913 = shalt.err (!%p910_p2)
}
  0x95   : > { %s914_s14 = scalar_lea.hbm %s1298_s22, 64  ;;  %s918_s8 = scalar_lea.hbm %s1406_s2, 128 }
  0x96   : > { %p915_p5 = scmp.ne.s32.totalorder %s1298_s22, %s914_s14  ;;  %p919_p0 = scmp.lt.u32.totalorder %s1298_s22, %s1406_s2 }
  0x97   : > { %p920_p12 = scmp.lt.u32.totalorder %s918_s8, %s914_s14  ;;  %p922_p7 = scmp.lt.u32.totalorder %s914_s14, %s1298_s22 }
  0x98   : > { %p916_p4 = pnand %p915_p5, %p1424_p3 }
  0x99   : > { %p921_p13 = por %p920_p12, %p919_p0 }
  0x9a   : > { %p917_p8 = pneg %p916_p4 }
  0x9b   : > { %p923_p10 = por %p922_p7, %p921_p13 }
  0x9d   : > { %p924_p9 = pnand %p923_p10, %p917_p8 }
  0x9f   : > { %927 = shalt.err (!%p924_p9)
}
  0xa0   : > { %736 = dma.vmem_to_hbm [thread:$0]  (%p1424_p3), %s1292_s9, 64, %s1298_s22, %s478_s13   ;;  %467 = vst [vmem:[#allocation4] sm:$0xf] %v466_v61 }
  0xa1   : > { %s312_s18 = scalar_lea.vmem [#allocation13], %s1270_s27  ;;  %s1355_s7 = scalar_lea.hbm %s1408_s4, %s1280_s10 }
  0xa2   : > { %s530_s12 = sshll.u32 %s312_s18, 4  ;;  %s1027_s9 = smov [#allocation13]   ;;  %s1349_s12 = int_to_ptr.vmem [resolvable:$true] %s530_s12 }
  0xa3   : > { %s928_s25 = scalar_lea.vmem %s1349_s12, 64  ;;  %s932_s27 = sshll.u32 %s1027_s9, 4  ;;  %s933_s27 = int_to_ptr.vmem [resolvable:$false] %s932_s27 }
  0xa4   : > { %p929_p11 = scmp.ne.s32.totalorder %s1349_s12, %s928_s25  ;;  %s934_s22 = scalar_lea.vmem %s933_s27, 128 }
  0xa5   : > { %p935_p2 = scmp.lt.s32.totalorder %s1349_s12, %s933_s27  ;;  %p936_p5 = scmp.lt.s32.totalorder %s934_s22, %s928_s25 }
  0xa6   : > { %p930_p1 = pnand %p929_p11, %p1424_p3 }
  0xa7   : > { %v475_v62 = vld [vmem:[#allocation4] sm:$0xf]  ;;  %p937_p4 = por %p936_p5, %p935_p2 }
  0xa8   : > { %476 = vst [vmem:[%s312_s18] sm:$0xf] %v475_v62  ;;  %p931_p6 = pneg %p930_p1 }
  0xaa   : > { %p938_p8 = pnand %p937_p4, %p931_p6 }
  0xac   : > { %941 = shalt.err (!%p938_p8)
}
  0xad   : > { %s942_s10 = scalar_lea.hbm %s1355_s7, 64  ;;  %s946_s26 = scalar_lea.hbm %s1408_s4, 128 }
  0xae   : > { %p943_p0 = scmp.ne.s32.totalorder %s1355_s7, %s942_s10  ;;  %p947_p7 = scmp.lt.u32.totalorder %s1355_s7, %s1408_s4 }
  0xaf   : > { %p948_p10 = scmp.lt.u32.totalorder %s946_s26, %s942_s10  ;;  %p950_p11 = scmp.lt.u32.totalorder %s942_s10, %s1355_s7 }
  0xb0   : > { %p944_p12 = pnand %p943_p0, %p1424_p3 }
  0xb1   : > { %p949_p9 = por %p948_p10, %p947_p7 }
  0xb2   : > { %p945_p13 = pneg %p944_p12 }
  0xb3   : > { %p951_p1 = por %p950_p11, %p949_p9 }
  0xb5   : > { %p952_p6 = pnand %p951_p1, %p945_p13 }
  0xb7   : > { %955 = shalt.err (!%p952_p6)
}
  0xb8   : > { %738 = dma.vmem_to_hbm [thread:$0]  (%p1424_p3), %s1349_s12, 64, %s1355_s7, %s1302_s11  }
  0xb9 PF: > { %s542_s6 = sand.u32 1, %s998_s15   ;;  %p1425_p2 = scmp.ne.s32.totalorder %s1417_s30, 0 }
  0xba   : > { %p1426_p5 = scmp.ge.s32.totalorder %s1018_s20, 2  ;;  %s543_s21 = scalar_lea.sflag [#allocation7], %s542_s6 }
  0xbc   : > { %p750_p4 = pnand %p1426_p5, %p1425_p2 }
  0xbe   : > { %989 = dma.done.wait (!%p750_p4), %s543_s21, 64  }
  0xbf   : > { %991 = vsyncadd (!%p750_p4), %s543_s21, 4294967232  ;;  %s1427_s18 = sadd.s32 4294967294, %s1018_s20  }
  0xc0   : > { %s551_s0 = sand.u32 1, %s1427_s18  }
  0xc1   : > { %s552_s5 = scalar_lea.sflag [#allocation12], %s551_s0 }
  0xc2   : > { %993 = dma.done.wait (!%p750_p4), %s552_s5, 128  }
  0xc3   : > { %995 = vsyncadd (!%p750_p4), %s552_s5, 4294967168  ;;  %s27_s20 = sadd.s32 1, %s1018_s20   ;;  %s1428_s15 = smov %s1002_s16 }
  0xc4   : > { %p24_p3 = scmp.ge.s32.totalorder %s27_s20, 4   ;;  %s1429_s16 = smov %s1006_s17 }
  0xc5   : > { %s1430_s17 = smov %s1115_s29  ;;  %s1431_s18 = smov %s1014_s19 }
  0xc6   : > { %s1432_s19 = smov %s1434_s23  ;;  %26 = sbr.rel (!%p24_p3) target bundleno = 12 (0xc), region = 126 }
  0xcd   :  { %566 = vsyncpa [#allocation6], 1 }
  0xce   :  { %568 = vsyncpa [#allocation6 + $0x1], 1 }
  0xcf   :  { %569 = vsyncpa [#allocation9], 1 }
  0xd0   :  { %571 = vsyncpa [#allocation9 + $0x1], 1 }
  0xd1   :  { %572 = vsyncpa [#allocation7], 1 }
  0xd2   :  { %574 = vsyncpa [#allocation7 + $0x1], 1 }
  0xd3   :  { %575 = vsyncpa [#allocation12], 1 }
  0xd4   :  { %577 = vsyncpa [#allocation12 + $0x1], 1 }

</bundles_post_ra>
